<compile_context>
chip_gen: v7x
topology: tpu7x:2x2x1
jax: 0.10.0
libtpu: 0.0.40
codegen_flags: <defaults>
</compile_context>

<pallas_src>
import functools

import jax
import jax.numpy as jnp
from jax.experimental import pallas as pl
from jax.experimental.pallas import tpu as pltpu

C_IN = 2
C_HID = 128
C_OUT = 128
BN_EPS = 1e-5
LANE = 128


def _round_up(x, m):
    return -(-x // m) * m


def _pos_embed_kernel(x_ref, w1_ref, b1_ref, w2_ref, b2_ref, o_ref):
    # x_ref:  (C_IN, T)      pixel tile, channel-major (tokens on lanes), f32
    # w1_ref: (C_HID, C_IN)  conv1 weight with BN scale folded in, f32
    # b1_ref: (C_HID, 1)     conv1 bias with BN scale/shift folded in, f32
    # w2_ref: (C_OUT, C_HID) conv2 weight (PyTorch (out,in) layout), bf16
    # b2_ref: (C_OUT, 1)     conv2 bias, f32
    # o_ref:  (C_OUT, T)     output tile (bf16 by default)
    x = x_ref[...].astype(jnp.float32)

    # conv1 (1x1, K=2) + folded BN: two VPU broadcast FMAs; keeps the MXU free.
    h = (w1_ref[:, 0:1] * x[0:1, :]
         + w1_ref[:, 1:2] * x[1:2, :]
         + b1_ref[...])
    h = jnp.maximum(h, 0.0)  # ReLU

    # conv2 (1x1) == (128,128) @ (128,T) on the MXU: bf16 operands, f32 acc.
    out = jnp.dot(w2_ref[...], h.astype(jnp.bfloat16),
                  preferred_element_type=jnp.float32)
    out = out + b2_ref[...]
    o_ref[...] = out.astype(o_ref.dtype)


@functools.partial(jax.jit, static_argnames=("tile_hw", "out_dtype"))
def position_embedding_learned(xyz_nchw, params, tile_hw=4096,
                               out_dtype=jnp.bfloat16):
    """xyz_nchw: (N, 2, H, W) -> (N, 128, H, W) position embedding.

    out_dtype=jnp.bfloat16 halves the dominant HBM writeback; pass
    jnp.float32 for bit-for-bit parity with the PyTorch module's dtype.
    """
    w1, b1, gamma, beta, run_mean, run_var, w2, b2 = params

    x = xyz_nchw.astype(jnp.float32)
    N, C, H, W = x.shape
    assert C == C_IN
    HW = H * W
    x = x.reshape(N, C_IN, HW)  # free reshape: H, W contiguous

    # Lane tile: multiple of 128, capped by tile_hw and by HW rounded up.
    tile = min(max(tile_hw, LANE), _round_up(HW, LANE))
    tile = _round_up(tile, LANE)
    # Keep >= 4 grid steps when possible so the v7x 2-TC megacore has work on
    # both cores and the double-buffer pipeline can overlap DMA with compute.
    while tile > LANE and N * pl.cdiv(HW, tile) < 4:
        tile = max(LANE, _round_up(tile // 2, LANE))

    # Fold BatchNorm (inference / running stats) into conv1.
    scale = gamma * jax.lax.rsqrt(run_var + BN_EPS)          # (128,)
    shift = beta - run_mean * scale                          # (128,)
    w1f = w1 * scale[:, None]                                # (128, 2)
    b1f = (b1 * scale + shift)[:, None]                      # (128, 1)
    w2b = w2.astype(jnp.bfloat16)                            # MXU operand
    b2c = b2[:, None]                                        # (128, 1)

    grid = (N, pl.cdiv(HW, tile))  # ragged tail block clipped by Pallas
    out = pl.pallas_call(
        _pos_embed_kernel,
        out_shape=jax.ShapeDtypeStruct((N, C_OUT, HW), out_dtype),
        grid_spec=pltpu.PrefetchScalarGridSpec(
            num_scalar_prefetch=0,
            grid=grid,
            in_specs=[
                pl.BlockSpec((None, C_IN, tile), lambda n, t: (n, 0, t)),  # x
                pl.BlockSpec((C_HID, C_IN), lambda n, t: (0, 0)),          # w1f
                pl.BlockSpec((C_HID, 1), lambda n, t: (0, 0)),             # b1f
                pl.BlockSpec((C_OUT, C_HID), lambda n, t: (0, 0)),         # w2
                pl.BlockSpec((C_OUT, 1), lambda n, t: (0, 0)),             # b2
            ],
            out_specs=pl.BlockSpec((None, C_OUT, tile), lambda n, t: (n, 0, t)),
        ),
        compiler_params=pltpu.CompilerParams(
            dimension_semantics=("parallel", "parallel"),
            vmem_limit_bytes=48 * 1024 * 1024),
    )(x, w1f, b1f, w2b, b2c)

    return out.reshape(N, C_OUT, H, W)  # free reshape, already channel-major


def init_params(key):
    """Deterministic synthetic parameters with the module's shapes.

    Conv2d(2,128,1):   weight (128,2,1,1)   -> stored as (128,2);   bias (128,)
    BatchNorm2d(128):  gamma/beta/running_mean/running_var (128,)
    Conv2d(128,128,1): weight (128,128,1,1) -> stored as (128,128); bias (128,)
    """
    k1, k2, k3, k4, k5, k6, k7 = jax.random.split(key, 7)
    w1 = jax.random.normal(k1, (C_HID, C_IN), jnp.float32) * 0.1
    b1 = jax.random.normal(k2, (C_HID,), jnp.float32) * 0.1
    gamma = 1.0 + 0.1 * jax.random.normal(k3, (C_HID,), jnp.float32)
    beta = 0.1 * jax.random.normal(k4, (C_HID,), jnp.float32)
    run_mean = 0.05 * jax.random.normal(k5, (C_HID,), jnp.float32)
    run_var = 1.0 + 0.1 * jax.random.uniform(k6, (C_HID,), jnp.float32)
    w2 = jax.random.normal(k7, (C_OUT, C_HID), jnp.float32) * 0.05
    b2 = 0.01 * jnp.arange(C_OUT, dtype=jnp.float32)
    return (w1, b1, gamma, beta, run_mean, run_var, w2, b2)


def _reference(xyz_nchw, params):
    """Pure-JAX f32 reference of the same forward (eval-mode BatchNorm)."""
    w1, b1, gamma, beta, run_mean, run_var, w2, b2 = params
    x = xyz_nchw.astype(jnp.float32)  # (N, 2, H, W)
    hp = jax.lax.Precision.HIGHEST
    h = jnp.einsum('oi,nihw->nohw', w1, x, precision=hp) \
        + b1[None, :, None, None]
    inv = jax.lax.rsqrt(run_var + BN_EPS)
    h = (h - run_mean[None, :, None, None]) * (gamma * inv)[None, :, None, None] \
        + beta[None, :, None, None]
    h = jnp.maximum(h, 0.0)
    out = jnp.einsum('oi,nihw->nohw', w2, h, precision=hp) \
        + b2[None, :, None, None]
    return out  # (N, 128, H, W)


def _check(xyz, params, name):
    out = jax.block_until_ready(position_embedding_learned(xyz, params))
    ref = _reference(xyz, params)
    assert out.shape == ref.shape, (name, out.shape, ref.shape)
    out32 = out.astype(jnp.float32)
    # bf16 output + bf16 MXU operands => looser tolerance than pure f32.
    ok = jnp.allclose(out32, ref, atol=3e-2, rtol=3e-2)
    assert ok, (name, float(jnp.max(jnp.abs(out32 - ref))))


if __name__ == "__main__":
    key = jax.random.PRNGKey(0)
    k_x1, k_x2, k_p = jax.random.split(key, 3)
    params = init_params(k_p)

    # Small shapes consistent with the forward: xyz is (N, 2, H, W).
    xyz = jax.random.normal(k_x1, (2, C_IN, 16, 16), jnp.float32)
    _check(xyz, params, "even")

    # Ragged H*W (153 tokens) exercises the clipped tail block (no wrapper
    # pad/slice round trip).
    xyz_ragged = jax.random.normal(k_x2, (2, C_IN, 9, 17), jnp.float32)
    _check(xyz_ragged, params, "ragged")

    print("KERNEL_OK")
</pallas_src>

<mosaic_0001>
module attributes {stable_mosaic.version = 11 : i64} {
  func.func @_pos_embed_kernel(%arg0: i32, %arg1: i32, %arg2: memref<1x2x128xf32, #tpu.memory_space<vmem>>, %arg3: memref<128x2xf32, #tpu.memory_space<vmem>>, %arg4: memref<128x1xf32, #tpu.memory_space<vmem>>, %arg5: memref<128x128xbf16, #tpu.memory_space<vmem>>, %arg6: memref<128x1xf32, #tpu.memory_space<vmem>>, %arg7: memref<1x128x128xbf16, #tpu.memory_space<vmem>>) attributes {dimension_semantics = [#tpu.dimension_semantics<parallel>, #tpu.dimension_semantics<parallel>], iteration_bounds = array<i64: 2, 2>, scalar_prefetch = 0 : i64, scratch_operands = 0 : i64, tpu.core_type = #tpu.core_type<tc>, window_params = [{transform_indices = @transform_0, window_bounds = array<i64: 1, 2, 128>}, {pipeline_mode = #tpu.pipeline_mode<synchronous>, transform_indices = @transform_1, window_bounds = array<i64: 128, 2>}, {pipeline_mode = #tpu.pipeline_mode<synchronous>, transform_indices = @transform_2, window_bounds = array<i64: 128, 1>}, {pipeline_mode = #tpu.pipeline_mode<synchronous>, transform_indices = @transform_3, window_bounds = array<i64: 128, 128>}, {pipeline_mode = #tpu.pipeline_mode<synchronous>, transform_indices = @transform_4, window_bounds = array<i64: 128, 1>}, {transform_indices = @transform_5, window_bounds = array<i64: 1, 128, 128>}]} {
    %c0 = arith.constant 0 : index
    %c0_0 = arith.constant 0 : index
    %c0_1 = arith.constant 0 : index
    %0 = vector.load %arg2[%c0, %c0_0, %c0_1] : memref<1x2x128xf32, #tpu.memory_space<vmem>>, vector<1x2x128xf32>
    %1 = vector.shape_cast %0 : vector<1x2x128xf32> to vector<2x128xf32>
    %c0_2 = arith.constant 0 : index
    %c0_3 = arith.constant 0 : index
    %2 = vector.load %arg3[%c0_2, %c0_3] : memref<128x2xf32, #tpu.memory_space<vmem>>, vector<128x1xf32>
    %3 = vector.extract_strided_slice %1 {offsets = [0, 0], sizes = [1, 128], strides = [1, 1]} : vector<2x128xf32> to vector<1x128xf32>
    %4 = vector.broadcast %2 : vector<128x1xf32> to vector<128x128xf32>
    %5 = vector.broadcast %3 : vector<1x128xf32> to vector<128x128xf32>
    %6 = arith.mulf %4, %5 : vector<128x128xf32>
    %c0_4 = arith.constant 0 : index
    %c1 = arith.constant 1 : index
    %7 = vector.load %arg3[%c0_4, %c1] : memref<128x2xf32, #tpu.memory_space<vmem>>, vector<128x1xf32>
    %8 = vector.extract_strided_slice %1 {offsets = [1, 0], sizes = [1, 128], strides = [1, 1]} : vector<2x128xf32> to vector<1x128xf32>
    %9 = vector.broadcast %7 : vector<128x1xf32> to vector<128x128xf32>
    %10 = vector.broadcast %8 : vector<1x128xf32> to vector<128x128xf32>
    %11 = arith.mulf %9, %10 : vector<128x128xf32>
    %12 = arith.addf %6, %11 : vector<128x128xf32>
    %c0_5 = arith.constant 0 : index
    %c0_6 = arith.constant 0 : index
    %13 = vector.load %arg4[%c0_5, %c0_6] : memref<128x1xf32, #tpu.memory_space<vmem>>, vector<128x1xf32>
    %14 = vector.broadcast %13 : vector<128x1xf32> to vector<128x128xf32>
    %15 = arith.addf %12, %14 : vector<128x128xf32>
    %cst = arith.constant 0.000000e+00 : f32
    %16 = vector.broadcast %cst : f32 to vector<128x128xf32>
    %17 = arith.maximumf %15, %16 : vector<128x128xf32>
    %c0_7 = arith.constant 0 : index
    %c0_8 = arith.constant 0 : index
    %18 = vector.load %arg5[%c0_7, %c0_8] : memref<128x128xbf16, #tpu.memory_space<vmem>>, vector<128x128xbf16>
    %19 = arith.truncf %17 : vector<128x128xf32> to vector<128x128xbf16>
    %cst_9 = arith.constant dense<0.000000e+00> : vector<128x128xf32>
    %20 = tpu.matmul %18, %19, %cst_9 {dimension_numbers = #tpu.dot_dimension_numbers<[1], [0], [0], [1], [0, 0, 1, 1], [], []>} : vector<128x128xbf16>, vector<128x128xbf16>, vector<128x128xf32> -> vector<128x128xf32>
    %c0_10 = arith.constant 0 : index
    %c0_11 = arith.constant 0 : index
    %21 = vector.load %arg6[%c0_10, %c0_11] : memref<128x1xf32, #tpu.memory_space<vmem>>, vector<128x1xf32>
    %22 = vector.broadcast %21 : vector<128x1xf32> to vector<128x128xf32>
    %23 = arith.addf %20, %22 : vector<128x128xf32>
    %24 = arith.truncf %23 : vector<128x128xf32> to vector<128x128xbf16>
    %c0_12 = arith.constant 0 : index
    %c0_13 = arith.constant 0 : index
    %c0_14 = arith.constant 0 : index
    %25 = vector.load %arg7[%c0_12, %c0_13, %c0_14] : memref<1x128x128xbf16, #tpu.memory_space<vmem>>, vector<1x128x128xbf16>
    %26 = vector.shape_cast %25 : vector<1x128x128xbf16> to vector<128x128xbf16>
    %27 = vector.shape_cast %24 : vector<128x128xbf16> to vector<1x128x128xbf16>
    tpu.vector_store %arg7[%c0_12, %c0_13, %c0_14], %27 {strides = array<i32>} : memref<1x128x128xbf16, #tpu.memory_space<vmem>>, vector<1x128x128xbf16>,
    return
  }
  func.func @transform_0(%arg0: i32, %arg1: i32) -> (i32, i32, i32) {
    %c0_i32 = arith.constant 0 : i32
    %c0_i32_0 = arith.constant 0 : i32
    return %arg0, %c0_i32, %arg1 : i32, i32, i32
  }
  func.func @transform_1(%arg0: i32, %arg1: i32) -> (i32, i32) {
    %c0_i32 = arith.constant 0 : i32
    %c0_i32_0 = arith.constant 0 : i32
    %c0_i32_1 = arith.constant 0 : i32
    return %c0_i32, %c0_i32_0 : i32, i32
  }
  func.func @transform_2(%arg0: i32, %arg1: i32) -> (i32, i32) {
    %c0_i32 = arith.constant 0 : i32
    %c0_i32_0 = arith.constant 0 : i32
    %c0_i32_1 = arith.constant 0 : i32
    return %c0_i32, %c0_i32_0 : i32, i32
  }
  func.func @transform_3(%arg0: i32, %arg1: i32) -> (i32, i32) {
    %c0_i32 = arith.constant 0 : i32
    %c0_i32_0 = arith.constant 0 : i32
    %c0_i32_1 = arith.constant 0 : i32
    return %c0_i32, %c0_i32_0 : i32, i32
  }
  func.func @transform_4(%arg0: i32, %arg1: i32) -> (i32, i32) {
    %c0_i32 = arith.constant 0 : i32
    %c0_i32_0 = arith.constant 0 : i32
    %c0_i32_1 = arith.constant 0 : i32
    return %c0_i32, %c0_i32_0 : i32, i32
  }
  func.func @transform_5(%arg0: i32, %arg1: i32) -> (i32, i32, i32) {
    %c0_i32 = arith.constant 0 : i32
    %c0_i32_0 = arith.constant 0 : i32
    return %arg0, %c0_i32, %arg1 : i32, i32, i32
  }
}

</mosaic_0001>

<bundles_post_ra>
// kernel: position_embedding_learned.1
= control target key start
LH: loop header
LB: loop body
LE: loop exit
PB: predicated region body
PF: predicated region fallthrough
CT: control target
= control target key end

     0   :  { %s1451_s18 = smov 0   ;;  %s1453_s19 = smov 0   ;;  %s1820_s0 = inlined_call_operand.vmem [shape: f32[2,2,256], index: 0, kind: input, shape index: {}]   ;;  %s1821_s1 = inlined_call_operand.vmem [shape: f32[128,2], index: 1, kind: input, shape index: {}]   ;;  %s1822_s2 = inlined_call_operand.vmem [shape: f32[128,1], index: 2, kind: input, shape index: {}]   ;;  %s1823_s3 = inlined_call_operand.vmem [shape: bf16[128,128], index: 3, kind: input, shape index: {}]   ;;  %s1824_s4 = inlined_call_operand.vmem [shape: f32[128,1], index: 4, kind: input, shape index: {}]   ;;  %s1825_s5 = inlined_call_operand.vmem [shape: bf16[2,128,256], index: 5, kind: output, shape index: {}]  }
   0x1   :  { %s1455_s20 = smov 0   ;;  %s1457_s21 = smov 0  }
   0x2   :  { %s1459_s22 = smov 0   ;;  %s1461_s23 = smov 0  }
   0x3   :  { %s1463_s24 = smov 0  }
   0x4 LB: > { %s24_s25 = sadd.s32 1, %s1409_s22  ;;  %s27_s26 = sadd.s32 1, %s1413_s23  ;;  %s1417_s24 = sphi %s1463_s24, %s15_s24   ;;  %s1413_s23 = sphi %s1461_s23, %s1832_s23   ;;  %s1409_s22 = sphi %s1459_s22, %s1831_s22   ;;  %s1405_s21 = sphi %s1457_s21, %s1830_s21   ;;  %s1401_s20 = sphi %s1455_s20, %s1829_s20   ;;  %s1397_s19 = sphi %s1453_s19, %s1828_s19   ;;  %s1393_s18 = sphi %s1451_s18, %s1827_s18  }
   0x5   : > { %p25_p0 = scmp.ge.s32.totalorder %s24_s25, 2  ;;  %s1115_s27 = sadd.s32 4294967295, %s1417_s24  }
   0x6   : > { %p158_p1 = scmp.ne.s32.totalorder %s1397_s19, %s1393_s18  ;;  %p159_p2 = scmp.eq.s32.totalorder %s1115_s27, 3 }
   0x7   : > { %s1834_s25 = smov (%p25_p0, %s24_s25), 0  ;;  %s1836_s26 = smov (!%p25_p0, %s27_s26), %s1413_s23 }
   0x8   : > { %s144_s28 = ssub.s32 %s1409_s22, %s1834_s25  ;;  %p29_p3 = scmp.ge.s32.totalorder %s1836_s26, 2 }
   0x9   : > { %p1119_p4 = scmp.ge.s32.totalorder %s1417_s24, 1  ;;  %p1497_p5 = por %p159_p2, %p158_p1 }
   0xa   : > { %p206_p6 = scmp.lt.s32.totalorder %s1417_s24, 5  ;;  %s1838_s26 = smov (%p29_p3, %s1836_s26), 0 }
   0xb   : > { %s143_s30 = ssub.s32 %s1413_s23, %s1838_s26  ;;  %s148_s7 = sadd.s32 1, %s1397_s19 }
   0xc   : > { %p207_p7 = pnand %p1119_p4, %p206_p6  ;;  %s145_s6 = sor.u32 %s144_s28, %s143_s30 }
   0xd   : > { %p146_p8 = scmp.eq.s32.totalorder %s145_s6, 0  ;;  %v248_v0 = vld [vmem:[%s1821_s1 + $0x10] sm:$0xff] (!%p207_p7)  ;;  %v246_v1 = vld [vmem:[%s1821_s1] sm:$0xff] (!%p207_p7)  ;;  %v1419_v2 = vmov (!%p207_p7), 1   ;;  %v247_v4 = vld [vmem:[%s1821_s1 + $0x8] sm:$0xff] (!%p207_p7)  ;;  %v1420_v7 = vmov (!%p207_p7), 0   ;;  %v342_v56 = vlaneseq (!%p207_p7) }
   0xe   : > { %210 = sbr.rel (%p207_p7) target bundleno = 528 (0x210), region = 40  ;;  %1339 = vset.pattern.permute.xlu0 (!%p207_p7), %v1419_v2  ;;  %1337 = vset.pattern.permute.xlu1 (!%p207_p7), %v1419_v2  ;;  %v250_v3 = vld [vmem:[%s1821_s1 + $0x20] sm:$0xff] (!%p207_p7)  ;;  %v252_v5 = vld [vmem:[%s1821_s1 + $0x30] sm:$0xff] (!%p207_p7)  ;;  %v249_v6 = vld [vmem:[%s1821_s1 + $0x18] sm:$0xff] (!%p207_p7)  ;;  %p236_p9 = scmp.lt.s32.totalorder (!%p207_p7), %s1405_s21, 1 }
   0xf   : > { %s1508_s8 = scalar_select %p146_p8, %s1397_s19, %s148_s7  }
  0x10   : > { %371 = vperm.xlu0 (!%p207_p7), %1339, %v248_v0   ;;  %363 = vperm.xlu1 (!%p207_p7), %1337, %v246_v1   ;;  %v254_v8 = vld [vmem:[%s1821_s1 + $0x40] sm:$0xff] (!%p207_p7)  ;;  %v256_v9 = vld [vmem:[%s1821_s1 + $0x50] sm:$0xff] (!%p207_p7)  ;;  %v251_v13 = vld [vmem:[%s1821_s1 + $0x28] sm:$0xff] (!%p207_p7)  ;;  %p238_p10 = scmp.lt.s32.totalorder (!%p207_p7), %s1401_s20, 1  ;;  %v343_v60 = vshrl.u32 (!%p207_p7), %v342_v56, 7  ;;  %s233_s17 = sand.u32 (!%p207_p7), 1, %s1393_s18  }
  0x11   : > { %v462_v10 = vld [vmem:[%s1822_s2] sm:$0xff] (!%p207_p7)  ;;  %v1551_v12 = vld [vmem:[%s1821_s1 + $0x70] sm:$0xff] (!%p207_p7)  ;;  %v463_v15 = vld [vmem:[%s1822_s2 + $0x8] sm:$0xff] (!%p207_p7) }
  0x12   : > { %v1544_v11 = vld [vmem:[%s1821_s1 + $0x60] sm:$0xff] (!%p207_p7)  ;;  %v464_v14 = vld [vmem:[%s1822_s2 + $0x10] sm:$0xff] (!%p207_p7)  ;;  %v465_v16 = vld [vmem:[%s1822_s2 + $0x18] sm:$0xff] (!%p207_p7) }
  0x13   : > { %v253_v17 = vld [vmem:[%s1821_s1 + $0x38] sm:$0xff] (!%p207_p7)  ;;  %v467_v18 = vld [vmem:[%s1822_s2 + $0x28] sm:$0xff] (!%p207_p7)  ;;  %v466_v20 = vld [vmem:[%s1822_s2 + $0x20] sm:$0xff] (!%p207_p7) }
  0x14   : > { %379 = vperm.xlu0 (!%p207_p7), %1339, %v250_v3   ;;  %367 = vperm.xlu1 (!%p207_p7), %1337, %v247_v4   ;;  %v469_v19 = vld [vmem:[%s1822_s2 + $0x38] sm:$0xff] (!%p207_p7)  ;;  %v471_v21 = vld [vmem:[%s1822_s2 + $0x48] sm:$0xff] (!%p207_p7)  ;;  %v614_v25 = vld [vmem:[%s1824_s4] sm:$0xff] (!%p207_p7) }
  0x15   : > { %v473_v22 = vld [vmem:[%s1822_s2 + $0x58] sm:$0xff]  ;;  %v255_v23 = vld [vmem:[%s1821_s1 + $0x48] sm:$0xff]  ;;  %v616_v26 = vld [vmem:[%s1824_s4 + $0x10] sm:$0xff]  ;;  %s237_s6 = scalar_select %p236_p9, %s1405_s21, 1 }
  0x16   : > { %v475_v24 = vld [vmem:[%s1822_s2 + $0x68] sm:$0xff]  ;;  %v468_v27 = vld [vmem:[%s1822_s2 + $0x30] sm:$0xff]  ;;  %v618_v28 = vld [vmem:[%s1824_s4 + $0x20] sm:$0xff]  ;;  %s239_s10 = scalar_select %p238_p10, %s1401_s20, 1 }
  0x17   : > { %v620_v29 = vld [vmem:[%s1824_s4 + $0x30] sm:$0xff]  ;;  %v257_v30 = vld [vmem:[%s1821_s1 + $0x58] sm:$0xff]  ;;  %v622_v31 = vld [vmem:[%s1824_s4 + $0x40] sm:$0xff]  ;;  %s1121_s11 = sshll.u32 %s237_s6, 1 }
  0x18   : > { %387 = vperm.xlu0 %1339, %v252_v5   ;;  %1338 = vset.pattern.permute.xlu1 %v1420_v7  ;;  %v624_v32 = vld [vmem:[%s1824_s4 + $0x50] sm:$0xff]  ;;  %v470_v33 = vld [vmem:[%s1822_s2 + $0x40] sm:$0xff]  ;;  %v259_v36 = vld [vmem:[%s1821_s1 + $0x68] sm:$0xff]  ;;  %s241_s27 = sadd.s32 %s1121_s11, %s239_s10 }
  0x19   : > { %279 = vperm.xlu1 %1338, %v249_v6   ;;  %v626_v34 = vld [vmem:[%s1824_s4 + $0x60] sm:$0xff]  ;;  %v628_v35 = vld [vmem:[%s1824_s4 + $0x70] sm:$0xff]  ;;  %v261_v38 = vld [vmem:[%s1821_s1 + $0x78] sm:$0xff]  ;;  %s1122_s28 = sshll.u32 %s241_s27, 1  ;;  %s1120_s27 = sshll.u32 %s233_s17, 6 }
  0x1a   : > { %v472_v37 = vld [vmem:[%s1822_s2 + $0x50] sm:$0xff]  ;;  %v474_v39 = vld [vmem:[%s1822_s2 + $0x60] sm:$0xff]  ;;  %v477_v45 = vld [vmem:[%s1822_s2 + $0x78] sm:$0xff]  ;;  %s243_s12 = scalar_lea.vmem %s1820_s0, %s1122_s28  ;;  %s1766_s18 = scalar_lea.vmem [#allocation2], %s1120_s27 }
  0x1b   : > { %v476_v42 = vld [vmem:[%s1822_s2 + $0x70] sm:$0xff]  ;;  %v615_v48 = vld [vmem:[%s1824_s4 + $0x8] sm:$0xff]  ;;  %v617_v50 = vld [vmem:[%s1824_s4 + $0x18] sm:$0xff]  ;;  %s1148_s28 = sshll.u32 (%p1497_p5), %s1405_s21, 5 }
  0x1c   : > { %395 = vperm.xlu0 %1339, %v254_v8   ;;  %v1355_v52 = vld [vmem:[%s1823_s3] sm:$0xff]   ;;  %v619_v55 = vld [vmem:[%s1824_s4 + $0x28] sm:$0xff]  ;;  %v621_v59 = vld [vmem:[%s1824_s4 + $0x38] sm:$0xff]  ;;  %s943_s30 = sadd.s32 (%p1497_p5), %s1401_s20, %s1148_s28 }
  0x1d   : > { %1340 = vset.pattern.permute.xlu1 %v1419_v2  ;;  %v1356_v53 = vld [vmem:[%s1823_s3 + $0x20] sm:$0xff]   ;;  %1247 = vmatprep.mubr.bf16.mxu0 %v1355_v52  ;;  %v623_v63 = vld [vmem:[%s1824_s4 + $0x48] sm:$0xff]  ;;  %s1149_s29 = sshll.u32 (%p1497_p5), %s943_s30, 2 }
  0x1e   : > { %375 = vperm.xlu1 %1340, %v249_v6   ;;  %1255 = vmatprep.mubr.bf16.mxu1 %v1356_v53  ;;  %s945_s9 = scalar_lea.vmem (%p1497_p5), %s1825_s5, %s1149_s29 }
  0x20   : > { %403 = vperm.xlu0 %1339, %v256_v9  }
  0x22   : > { %1341 = vset.pattern.permute.xlu1 %v1420_v7 }
  0x23   : > { %480 = vperm.xlu1 %1341, %v462_v10  }
  0x24   : > { %411 = vperm.xlu0 %1339, %v1544_v11  }
  0x27   : > { %284 = vperm.xlu1 %1341, %v250_v3  }
  0x28   : > { %419 = vperm.xlu0 %1339, %v1551_v12  }
  0x2b   : > { %289 = vperm.xlu1 %1341, %v251_v13  }
  0x2c   : > { %1352 = vset.pattern.permute.xlu0 %v1420_v7 }
  0x2d   : > { %264 = vperm.xlu0 %1352, %v246_v1   ;;  %v344_v1 = vsub.s32 0, %v343_v60 }
  0x2f   : > { %1342 = vset.pattern.permute.xlu1 %v1419_v2 }
  0x30   : > { %383 = vperm.xlu1 %1342, %v251_v13  }
  0x31   : > { %269 = vperm.xlu0 %1352, %v247_v4  }
  0x34   : > { %1343 = vset.pattern.permute.xlu1 %v1420_v7 }
  0x35   : > { %274 = vperm.xlu0 %1352, %v248_v0   ;;  %490 = vperm.xlu1 %1343, %v464_v14   ;;  %v428_v0 = vsub.s32 1, %v343_v60 }
  0x39   : > { %485 = vperm.xlu0 %1352, %v463_v15   ;;  %294 = vperm.xlu1 %1343, %v252_v5   ;;  %v625_v5 = vld [vmem:[%s1824_s4 + $0x58] sm:$0xff] }
  0x3d   : > { %495 = vperm.xlu0 %1352, %v465_v16   ;;  %299 = vperm.xlu1 %1343, %v253_v17  }
  0x41   : > { %505 = vperm.xlu0 %1352, %v467_v18   ;;  %1344 = vset.pattern.permute.xlu1 %v1419_v2  ;;  %v629_v18 = vld [vmem:[%s1824_s4 + $0x78] sm:$0xff] }
  0x42   : > { %391 = vperm.xlu1 %1344, %v253_v17  }
  0x45   : > { %515 = vperm.xlu0 %1352, %v469_v19  }
  0x46   : > { %1345 = vset.pattern.permute.xlu1 %v1420_v7 }
  0x47   : > { %500 = vperm.xlu1 %1345, %v466_v20  }
  0x49   : > { %525 = vperm.xlu0 %1352, %v471_v21  }
  0x4b   : > { %304 = vperm.xlu1 %1345, %v254_v8  }
  0x4d   : > { %535 = vperm.xlu0 %1352, %v473_v22  }
  0x4f   : > { %309 = vperm.xlu1 %1345, %v255_v23  }
  0x51   : > { %545 = vperm.xlu0 %1352, %v475_v24  }
  0x53   : > { %1346 = vset.pattern.permute.xlu1 %v1419_v2 }
  0x54   : > { %399 = vperm.xlu1 %1346, %v255_v23  }
  0x55   : > { %632 = vperm.xlu0 %1352, %v614_v25  }
  0x58   : > { %1347 = vset.pattern.permute.xlu1 %v1420_v7 }
  0x59   : > { %642 = vperm.xlu0 %1352, %v616_v26   ;;  %510 = vperm.xlu1 %1347, %v468_v27  }
  0x5d   : > { %652 = vperm.xlu0 %1352, %v618_v28   ;;  %314 = vperm.xlu1 %1347, %v256_v9  }
  0x61   : > { %662 = vperm.xlu0 %1352, %v620_v29   ;;  %319 = vperm.xlu1 %1347, %v257_v30  }
  0x65   : > { %672 = vperm.xlu0 %1352, %v622_v31   ;;  %1348 = vset.pattern.permute.xlu1 %v1419_v2 }
  0x66   : > { %407 = vperm.xlu1 %1348, %v257_v30  }
  0x69   : > { %682 = vperm.xlu0 %1352, %v624_v32  }
  0x6a   : > { %1349 = vset.pattern.permute.xlu1 %v1420_v7 }
  0x6b   : > { %520 = vperm.xlu1 %1349, %v470_v33  }
  0x6d   : > { %692 = vperm.xlu0 %1352, %v626_v34  }
  0x6f   : > { %324 = vperm.xlu1 %1349, %v1544_v11   ;;  %v627_v11 = vld [vmem:[%s1824_s4 + $0x68] sm:$0xff] }
  0x71   : > { %702 = vperm.xlu0 %1352, %v628_v35  }
  0x73   : > { %329 = vperm.xlu1 %1349, %v259_v36  }
  0x77   : > { %1350 = vset.pattern.permute.xlu1 %v1419_v2 }
  0x78   : > { %415 = vperm.xlu1 %1350, %v259_v36  }
  0x7c   : > { %1351 = vset.pattern.permute.xlu1 %v1420_v7 }
  0x7d   : > { %530 = vperm.xlu1 %1351, %v472_v37  }
  0x81   : > { %334 = vperm.xlu1 %1351, %v1551_v12  }
  0x85   : > { %339 = vperm.xlu1 %1351, %v261_v38  }
  0x89   : > { %1353 = vset.pattern.permute.xlu1 %v1419_v2  ;;  %v245_v2 = vld [vmem:[%s243_s12] sm:$0x3] }
  0x8a   : > { %423 = vperm.xlu1 %1353, %v261_v38   ;;  %v1699_v6 = vrot.slane %v245_v2, %v428_v0 }
  0x8e   : > { %1354 = vset.pattern.permute.xlu1 %v1420_v7  ;;  %v1701_v7 = vrot.slane %v245_v2, %v344_v1 }
  0x8f   : > { %540 = vperm.xlu1 %1354, %v474_v39   ;;  %v364_v40 = vpop.permute.xlu1 %363  ;;  %v372_v41 = vpop.permute.xlu0 %371 }
  0x90   : > { %v430_v12 = vmul.f32 %v1699_v6, %v364_v40  ;;  %v432_v13 = vmul.f32 %v1699_v6, %v372_v41 }
  0x93   : > { %550 = vperm.xlu1 %1354, %v476_v42   ;;  %v368_v43 = vpop.permute.xlu1 %367  ;;  %v1653_v44 = vpop.permute.xlu0 %379 }
  0x94   : > { %v431_v19 = vmul.f32 %v1699_v6, %v368_v43  ;;  %v434_v40 = vmul.f32 %v1699_v6, %v1653_v44 }
  0x97   : > { %555 = vperm.xlu1 %1354, %v477_v45   ;;  %v1659_v46 = vpop.permute.xlu0 %387 }
  0x98   : > { %v280_v47 = vpop.permute.xlu1 %279 }
  0x99   : > { %v349_v27 = vmul.f32 %v1701_v7, %v280_v47 }
  0x9b   : > { %637 = vperm.xlu1 %1354, %v615_v48   ;;  %v1666_v49 = vpop.permute.xlu0 %395 }
  0x9d   : > { %v376_v51 = vpop.permute.xlu1 %375 }
  0x9e   : > { %v433_v21 = vmul.f32 %v1699_v6, %v376_v51 }
  0x9f   : > { %647 = vperm.xlu1 %1354, %v617_v50   ;;  %v1678_v54 = vpop.permute.xlu0 %403 }
  0xa0   : > { %v449_v32 = vadd.f32 %v433_v21, %v349_v27 }
  0xa2   : > { %v481_v57 = vpop.permute.xlu1 %480 }
  0xa3   : > { %657 = vperm.xlu1 %1354, %v619_v55   ;;  %v1683_v58 = vpop.permute.xlu0 %411 }
  0xa6   : > { %v285_v61 = vpop.permute.xlu1 %284 }
  0xa7   : > { %667 = vperm.xlu1 %1354, %v621_v59   ;;  %v1691_v62 = vpop.permute.xlu0 %419  ;;  %v350_v41 = vmul.f32 %v1701_v7, %v285_v61 }
  0xa9   : > { %v450_v51 = vadd.f32 %v434_v40, %v350_v41 }
  0xaa   : > { %v290_v3 = vpop.permute.xlu1 %289 }
  0xab   : > { %677 = vperm.xlu1 %1354, %v623_v63   ;;  %v351_v42 = vmul.f32 %v1701_v7, %v290_v3  ;;  %v436_v63 = vmul.f32 %v1699_v6, %v1659_v46 }
  0xac   : > { %v265_v4 = vpop.permute.xlu0 %264 }
  0xad   : > { %v346_v8 = vmul.f32 %v1701_v7, %v265_v4 }
  0xaf   : > { %687 = vperm.xlu1 %1354, %v625_v5   ;;  %v384_v9 = vpop.permute.xlu1 %383  ;;  %v446_v14 = vadd.f32 %v430_v12, %v346_v8 }
  0xb0   : > { %v270_v10 = vpop.permute.xlu0 %269  ;;  %v435_v37 = vmul.f32 %v1699_v6, %v384_v9 }
  0xb1   : > { %v347_v15 = vmul.f32 %v1701_v7, %v270_v10  ;;  %v558_v22 = vadd.f32 %v481_v57, %v446_v14 }
  0xb2   : > { %v451_v48 = vadd.f32 %v435_v37, %v351_v42 }
  0xb3   : > { %697 = vperm.xlu1 %1354, %v627_v11   ;;  %v447_v24 = vadd.f32 %v431_v19, %v347_v15  ;;  %v574_v30 = vmax.f32 %v558_v22, 0.0 }
  0xb4   : > { %v275_v16 = vpop.permute.xlu0 %274  ;;  %v491_v17 = vpop.permute.xlu1 %490 }
  0xb5   : > { %v348_v20 = vmul.f32 %v1701_v7, %v275_v16  ;;  %v438_v16 = vmul.f32 %v1699_v6, %v1666_v49 }
  0xb7   : > { %v448_v23 = vadd.f32 %v432_v13, %v348_v20  ;;  %707 = vperm.xlu1 %1354, %v629_v18  }
  0xb8   : > { %v486_v25 = vpop.permute.xlu0 %485  ;;  %v295_v26 = vpop.permute.xlu1 %294 }
  0xb9   : > { %v559_v28 = vadd.f32 %v486_v25, %v447_v24  ;;  %v560_v29 = vadd.f32 %v491_v17, %v448_v23  ;;  %v352_v0 = vmul.f32 %v1701_v7, %v295_v26 }
  0xbb   : > { %v575_v31 = vmax.f32 %v559_v28, 0.0  ;;  %v576_v38 = vmax.f32 %v560_v29, 0.0  ;;  %v452_v5 = vadd.f32 %v436_v63, %v352_v0 }
  0xbc   : > { %v496_v33 = vpop.permute.xlu0 %495  ;;  %v300_v34 = vpop.permute.xlu1 %299 }
  0xbd   : > { %v606_v35 = vpack.c.bf16 %v575_v31, %v574_v30  ;;  %v561_v36 = vadd.f32 %v496_v33, %v449_v32  ;;  %v353_v61 = vmul.f32 %v1701_v7, %v300_v34  ;;  %v440_v34 = vmul.f32 %v1699_v6, %v1678_v54 }
  0xbf   : > { %v577_v39 = vmax.f32 %v561_v36, 0.0  ;;  %1231 = vmatprep.subr.bf16.mxu0 %v606_v35  ;;  %1263 = vmatprep.subr.bf16.mxu1 %v606_v35 }
  0xc0   : > { %1232 = vmatpush3.bf16.msra.mxu0 %v606_v35  ;;  %1271 = vmatpush3.bf16.msra.mxu1 %v606_v35  ;;  %v506_v47 = vpop.permute.xlu0 %505 }
  0xc1   : > { %v607_v43 = vpack.c.bf16 %v577_v39, %v576_v38  ;;  %v392_v45 = vpop.permute.xlu1 %391  ;;  %v563_v50 = vadd.f32 %v506_v47, %v451_v48 }
  0xc2   : > { %v437_v60 = vmul.f32 %v1699_v6, %v392_v45 }
  0xc3   : > { %1233 = vmatprep.subr.bf16.mxu0 %v607_v43  ;;  %1264 = vmatprep.subr.bf16.mxu1 %v607_v43  ;;  %v579_v55 = vmax.f32 %v563_v50, 0.0 }
  0xc4   : > { %1234 = vmatpush3.bf16.msra.mxu0 %v607_v43  ;;  %1272 = vmatpush3.bf16.msra.mxu1 %v607_v43  ;;  %v453_v1 = vadd.f32 %v437_v60, %v353_v61  ;;  %v516_v3 = vpop.permute.xlu0 %515  ;;  %v444_v60 = vmul.f32 %v1699_v6, %v1691_v62 }
  0xc6   : > { %v501_v52 = vpop.permute.xlu1 %500  ;;  %v565_v4 = vadd.f32 %v516_v3, %v453_v1 }
  0xc7   : > { %v562_v53 = vadd.f32 %v501_v52, %v450_v51  ;;  %v442_v52 = vmul.f32 %v1699_v6, %v1683_v58 }
  0xc8   : > { %v581_v10 = vmax.f32 %v565_v4, 0.0  ;;  %v526_v20 = vpop.permute.xlu0 %525 }
  0xc9   : > { %v578_v56 = vmax.f32 %v562_v53, 0.0 }
  0xca   : > { %v305_v57 = vpop.permute.xlu1 %304 }
  0xcb   : > { %v608_v44 = vpack.c.bf16 %v579_v55, %v578_v56  ;;  %v354_v17 = vmul.f32 %v1701_v7, %v305_v57 }
  0xcc   : > { %v536_v35 = vpop.permute.xlu0 %535 }
  0xcd   : > { %1235 = vmatprep.subr.bf16.mxu0 %v608_v44  ;;  %1265 = vmatprep.subr.bf16.mxu1 %v608_v44  ;;  %v454_v22 = vadd.f32 %v438_v16, %v354_v17 }
  0xce   : > { %v310_v59 = vpop.permute.xlu1 %309  ;;  %1236 = vmatpush3.bf16.msra.mxu0 %v608_v44  ;;  %1273 = vmatpush3.bf16.msra.mxu1 %v608_v44 }
  0xcf   : > { %v355_v15 = vmul.f32 %v1701_v7, %v310_v59 }
  0xd0   : > { %v546_v53 = vpop.permute.xlu0 %545 }
  0xd3   : > { %v400_v2 = vpop.permute.xlu1 %399 }
  0xd4   : > { %v439_v46 = vmul.f32 %v1699_v6, %v400_v2 }
  0xd6   : > { %v455_v18 = vadd.f32 %v439_v46, %v355_v15  ;;  %v1362_v46 = vld [vmem:[%s1823_s3 + $0x38] sm:$0xff]   ;;  %v633_v15 = vpop.permute.xlu0 %632 }
  0xd8   : > { %v511_v8 = vpop.permute.xlu1 %510  ;;  %v567_v21 = vadd.f32 %v526_v20, %v455_v18 }
  0xd9   : > { %v564_v9 = vadd.f32 %v511_v8, %v452_v5 }
  0xda   : > { %v583_v26 = vmax.f32 %v567_v21, 0.0  ;;  %v643_v17 = vpop.permute.xlu0 %642 }
  0xdb   : > { %v580_v11 = vmax.f32 %v564_v9, 0.0 }
  0xdc   : > { %v315_v12 = vpop.permute.xlu1 %314 }
  0xdd   : > { %v609_v13 = vpack.c.bf16 %v581_v10, %v580_v11  ;;  %v356_v31 = vmul.f32 %v1701_v7, %v315_v12  ;;  %v1359_v12 = vld [vmem:[%s1823_s3 + $0x10] sm:$0xff]  }
  0xdf   : > { %1237 = vmatprep.subr.bf16.mxu0 %v609_v13  ;;  %1266 = vmatprep.subr.bf16.mxu1 %v609_v13  ;;  %v456_v37 = vadd.f32 %v440_v34, %v356_v31 }
  0xe0   : > { %v320_v14 = vpop.permute.xlu1 %319  ;;  %1238 = vmatpush3.bf16.msra.mxu0 %v609_v13  ;;  %1274 = vmatpush3.bf16.msra.mxu1 %v609_v13  ;;  %v1360_v13 = vld [vmem:[%s1823_s3 + $0x30] sm:$0xff]  }
  0xe1   : > { %v357_v30 = vmul.f32 %v1701_v7, %v320_v14  ;;  %v1361_v14 = vld [vmem:[%s1823_s3 + $0x18] sm:$0xff]  }
  0xe5   : > { %v408_v19 = vpop.permute.xlu1 %407 }
  0xe6   : > { %v441_v49 = vmul.f32 %v1699_v6, %v408_v19  ;;  %v653_v19 = vpop.permute.xlu0 %652 }
  0xe8   : > { %v457_v32 = vadd.f32 %v441_v49, %v357_v30 }
  0xea   : > { %v521_v23 = vpop.permute.xlu1 %520  ;;  %v569_v36 = vadd.f32 %v536_v35, %v457_v32  ;;  %v663_v21 = vpop.permute.xlu0 %662 }
  0xeb   : > { %v566_v24 = vadd.f32 %v521_v23, %v454_v22 }
  0xec   : > { %v585_v41 = vmax.f32 %v569_v36, 0.0 }
  0xed   : > { %v582_v25 = vmax.f32 %v566_v24, 0.0 }
  0xee   : > { %v325_v27 = vpop.permute.xlu1 %324  ;;  %v673_v23 = vpop.permute.xlu0 %672 }
  0xef   : > { %v610_v28 = vpack.c.bf16 %v583_v26, %v582_v25  ;;  %v358_v54 = vmul.f32 %v1701_v7, %v325_v27 }
  0xf1   : > { %1239 = vmatprep.subr.bf16.mxu0 %v610_v28  ;;  %1267 = vmatprep.subr.bf16.mxu1 %v610_v28  ;;  %v458_v56 = vadd.f32 %v442_v52, %v358_v54 }
  0xf2   : > { %v330_v29 = vpop.permute.xlu1 %329  ;;  %1240 = vmatpush3.bf16.msra.mxu0 %v610_v28  ;;  %1275 = vmatpush3.bf16.msra.mxu1 %v610_v28  ;;  %v683_v25 = vpop.permute.xlu0 %682 }
  0xf3   : > { %v359_v48 = vmul.f32 %v1701_v7, %v330_v29 }
  0xf6   : > { %v693_v27 = vpop.permute.xlu0 %692 }
  0xf7   : > { %v416_v33 = vpop.permute.xlu1 %415 }
  0xf8   : > { %v443_v47 = vmul.f32 %v1699_v6, %v416_v33 }
  0xfa   : > { %v459_v50 = vadd.f32 %v443_v47, %v359_v48 }
  0xfc   : > { %v531_v38 = vpop.permute.xlu1 %530  ;;  %v571_v55 = vadd.f32 %v546_v53, %v459_v50  ;;  %v703_v50 = vpop.permute.xlu0 %702 }
  0xfd   : > { %v568_v39 = vadd.f32 %v531_v38, %v456_v37 }
  0xfe   : > { %v587_v0 = vmax.f32 %v571_v55, 0.0 }
  0xff   : > { %v584_v40 = vmax.f32 %v568_v39, 0.0 }
 0x100   : > { %v335_v42 = vpop.permute.xlu1 %334 }
 0x101   : > { %v611_v43 = vpack.c.bf16 %v585_v41, %v584_v40  ;;  %v360_v44 = vmul.f32 %v1701_v7, %v335_v42 }
 0x103   : > { %1241 = vmatprep.subr.bf16.mxu0 %v611_v43  ;;  %1268 = vmatprep.subr.bf16.mxu1 %v611_v43  ;;  %v460_v4 = vadd.f32 %v444_v60, %v360_v44 }
 0x104   : > { %v340_v45 = vpop.permute.xlu1 %339  ;;  %1242 = vmatpush3.bf16.msra.mxu0 %v611_v43  ;;  %1276 = vmatpush3.bf16.msra.mxu1 %v611_v43 }
 0x105   : > { %v361_v2 = vmul.f32 %v1701_v7, %v340_v45  ;;  %v1358_v7 = vld [vmem:[%s1823_s3 + $0x28] sm:$0xff]  }
 0x109   : > { %v424_v51 = vpop.permute.xlu1 %423 }
 0x10a   : > { %v445_v61 = vmul.f32 %v1699_v6, %v424_v51  ;;  %v1357_v6 = vld [vmem:[%s1823_s3 + $0x8] sm:$0xff]  }
 0x10c   : > { %v461_v5 = vadd.f32 %v445_v61, %v361_v2 }
 0x10e   : > { %v541_v57 = vpop.permute.xlu1 %540 }
 0x10f   : > { %v570_v59 = vadd.f32 %v541_v57, %v458_v56 }
 0x111   : > { %v586_v63 = vmax.f32 %v570_v59, 0.0 }
 0x112   : > { %v551_v1 = vpop.permute.xlu1 %550 }
 0x113   : > { %v612_v3 = vpack.c.bf16 %v587_v0, %v586_v63  ;;  %v572_v58 = vadd.f32 %v551_v1, %v460_v4 }
 0x115   : > { %1243 = vmatprep.subr.bf16.mxu0 %v612_v3  ;;  %1269 = vmatprep.subr.bf16.mxu1 %v612_v3  ;;  %v588_v10 = vmax.f32 %v572_v58, 0.0 }
 0x116   : > { %v556_v8 = vpop.permute.xlu1 %555  ;;  %1244 = vmatpush3.bf16.msra.mxu0 %v612_v3  ;;  %1277 = vmatpush3.bf16.msra.mxu1 %v612_v3 }
 0x117   : > { %v573_v9 = vadd.f32 %v556_v8, %v461_v5 }
 0x119   : > { %v589_v11 = vmax.f32 %v573_v9, 0.0 }
 0x11a   : > { %v638_v16 = vpop.permute.xlu1 %637 }
 0x11b   : > { %v613_v62 = vpack.c.bf16 %v589_v11, %v588_v10 }
 0x11d   : > { %1245 = vmatprep.subr.bf16.mxu0 %v613_v62  ;;  %1270 = vmatprep.subr.bf16.mxu1 %v613_v62 }
 0x11e   : > { %1246 = vmatpush3.bf16.msra.mxu0 %v613_v62  ;;  %1278 = vmatpush3.bf16.msra.mxu1 %v613_v62  ;;  %v648_v18 = vpop.permute.xlu1 %647 }
 0x121   : > { %1248 = vmatmul.mubr.bf16.vlgmr.msra.gmra.mrb[0].mxu0 %v1357_v6  ;;  %1256 = vmatmul.mubr.bf16.vlgmr.msra.gmra.mrb[0].mxu1 %v1358_v7 }
 0x122   : > { %1251 = vmatprep.mubr.bf16.mxu0 %v1359_v12  ;;  %1259 = vmatprep.mubr.bf16.mxu1 %v1360_v13  ;;  %v658_v20 = vpop.permute.xlu1 %657 }
 0x126   : > { %v668_v22 = vpop.permute.xlu1 %667 }
 0x129   : > { %1252 = vmatmul.mubr.bf16.gmra.mrb[4].mxu0 %v1361_v14  ;;  %1260 = vmatmul.mubr.bf16.gmra.mrb[4].mxu1 %v1362_v46 }
 0x12a   : > { %v678_v24 = vpop.permute.xlu1 %677 }
 0x12e   : > { %v688_v26 = vpop.permute.xlu1 %687 }
 0x132   : > { %v698_v28 = vpop.permute.xlu1 %697 }
 0x136   : > { %v708_v51 = vpop.permute.xlu1 %707 }
 0x1f4   : > { %v1249_v29 = vpop.f32.mrb[0].mxu0  ;;  %v1257_v49 = vpop.f32.mrb[0].mxu1 }
 0x1f5   : > { %v792_v30 = vpop.f32.mrb[1].mxu0  ;;  %v824_v31 = vpop.f32.mrb[1].mxu1  ;;  %v801_v34 = vadd.f32 %v1249_v29, %v643_v17  ;;  %v833_v35 = vadd.f32 %v1257_v49, %v683_v25 }
 0x1f6   : > { %v1250_v32 = vpop.f32.mrb[2].mxu0  ;;  %v1258_v33 = vpop.f32.mrb[2].mxu1  ;;  %v793_v40 = vadd.f32 %v792_v30, %v633_v15  ;;  %v825_v41 = vadd.f32 %v824_v31, %v673_v23 }
 0x1f7   : > { %v804_v36 = vadd.f32 %v1250_v32, %v648_v18  ;;  %v836_v37 = vadd.f32 %v1258_v33, %v688_v26  ;;  %v795_v38 = vpop.f32.mrb[3].mxu0  ;;  %v827_v39 = vpop.f32.mrb[3].mxu1 }
 0x1f8   : > { %v796_v42 = vadd.f32 %v795_v38, %v638_v16  ;;  %v828_v43 = vadd.f32 %v827_v39, %v678_v24 }
 0x1f9   : > { %v1176_v45 = vpack.c.bf16 %v804_v36, %v801_v34  ;;  %v1196_v47 = vpack.c.bf16 %v836_v37, %v833_v35 }
 0x1fa   : > { %v1171_v48 = vpack.c.bf16 %v796_v42, %v793_v40  ;;  %v1191_v54 = vpack.c.bf16 %v828_v43, %v825_v41 }
 0x1fb   : > { %1208 = vst [vmem:[%s1766_s18 + $0x8] sm:$0xff] %v1176_v45   ;;  %1212 = vst [vmem:[%s1766_s18 + $0x28] sm:$0xff] %v1196_v47  }
 0x1fc   : > { %1172 = vst [vmem:[%s1766_s18] sm:$0xff] %v1171_v48   ;;  %1211 = vst [vmem:[%s1766_s18 + $0x20] sm:$0xff] %v1191_v54   ;;  %v1253_v52 = vpop.f32.mrb[4].mxu0  ;;  %v1261_v53 = vpop.f32.mrb[4].mxu1 }
 0x1fd   : > { %v808_v55 = vpop.f32.mrb[5].mxu0  ;;  %v840_v56 = vpop.f32.mrb[5].mxu1  ;;  %v817_v59 = vadd.f32 %v1253_v52, %v663_v21  ;;  %v849_v60 = vadd.f32 %v1261_v53, %v703_v50 }
 0x1fe   : > { %v1254_v57 = vpop.f32.mrb[6].mxu0  ;;  %v1262_v44 = vpop.f32.mrb[6].mxu1  ;;  %v809_v2 = vadd.f32 %v808_v55, %v653_v19  ;;  %v841_v3 = vadd.f32 %v840_v56, %v693_v27  ;;  %941 = sbr.rel (!%p1497_p5) target bundleno = 528 (0x210), region = 44 }
 0x1ff   : > { %v820_v61 = vadd.f32 %v1254_v57, %v668_v22  ;;  %v852_v63 = vadd.f32 %v1262_v44, %v708_v51  ;;  %v811_v0 = vpop.f32.mrb[7].mxu0  ;;  %v843_v1 = vpop.f32.mrb[7].mxu1 }
 0x200   : > { %v812_v4 = vadd.f32 %v811_v0, %v658_v20  ;;  %v844_v58 = vadd.f32 %v843_v1, %v698_v28 }
 0x201   : > { %v1186_v5 = vpack.c.bf16 %v820_v61, %v817_v59  ;;  %v1206_v8 = vpack.c.bf16 %v852_v63, %v849_v60 }
 0x202   : > { %v1181_v9 = vpack.c.bf16 %v812_v4, %v809_v2  ;;  %v1201_v10 = vpack.c.bf16 %v844_v58, %v841_v3  ;;  %v965_v6 = vld [vmem:[%s1766_s18 + $0x8] sm:$0xf] (%p1497_p5)  ;;  %v967_v7 = vld [vmem:[%s1766_s18 + $0xc] sm:$0xf] (%p1497_p5) }
 0x203   : > { %1210 = vst [vmem:[%s1766_s18 + $0x18] sm:$0xff] %v1186_v5   ;;  %1214 = vst [vmem:[%s1766_s18 + $0x38] sm:$0xff] %v1206_v8   ;;  %v961_v11 = vld [vmem:[%s1766_s18] sm:$0xf] (%p1497_p5)  ;;  %v963_v62 = vld [vmem:[%s1766_s18 + $0x4] sm:$0xf] (%p1497_p5) }
 0x204   : > { %1209 = vst [vmem:[%s1766_s18 + $0x10] sm:$0xff] %v1181_v9   ;;  %1213 = vst [vmem:[%s1766_s18 + $0x30] sm:$0xff] %v1201_v10   ;;  %v977_v15 = vld [vmem:[%s1766_s18 + $0x20] sm:$0xf] (%p1497_p5)  ;;  %v979_v16 = vld [vmem:[%s1766_s18 + $0x24] sm:$0xf] (%p1497_p5) }
 0x205   : > { %962 = vst [vmem:[%s945_s9] sm:$0xf] %v961_v11  ;;  %964 = vst [vmem:[%s945_s9 + $0x8] sm:$0xf] %v963_v62  ;;  %v981_v17 = vld [vmem:[%s1766_s18 + $0x28] sm:$0xf] }
 0x206   : > { %966 = vst [vmem:[%s945_s9 + $0x10] sm:$0xf] %v965_v6  ;;  %968 = vst [vmem:[%s945_s9 + $0x18] sm:$0xf] %v967_v7  ;;  %v983_v18 = vld [vmem:[%s1766_s18 + $0x2c] sm:$0xf] }
 0x207   : > { %978 = vst [vmem:[%s945_s9 + $0x40] sm:$0xf] %v977_v15  ;;  %980 = vst [vmem:[%s945_s9 + $0x48] sm:$0xf] %v979_v16 }
 0x208   : > { %982 = vst [vmem:[%s945_s9 + $0x50] sm:$0xf] %v981_v17  ;;  %984 = vst [vmem:[%s945_s9 + $0x58] sm:$0xf] %v983_v18 }
 0x20a   : > { %v973_v14 = vld [vmem:[%s1766_s18 + $0x18] sm:$0xf]  ;;  %v975_v46 = vld [vmem:[%s1766_s18 + $0x1c] sm:$0xf] }
 0x20b   : > { %v969_v12 = vld [vmem:[%s1766_s18 + $0x10] sm:$0xf]  ;;  %v971_v13 = vld [vmem:[%s1766_s18 + $0x14] sm:$0xf]  ;;  %974 = vst [vmem:[%s945_s9 + $0x30] sm:$0xf] %v973_v14 }
 0x20c   : > { %970 = vst [vmem:[%s945_s9 + $0x20] sm:$0xf] %v969_v12  ;;  %972 = vst [vmem:[%s945_s9 + $0x28] sm:$0xf] %v971_v13  ;;  %v985_v19 = vld [vmem:[%s1766_s18 + $0x30] sm:$0xf] }
 0x20d   : > { %976 = vst [vmem:[%s945_s9 + $0x38] sm:$0xf] %v975_v46  ;;  %986 = vst [vmem:[%s945_s9 + $0x60] sm:$0xf] %v985_v19  ;;  %v987_v20 = vld [vmem:[%s1766_s18 + $0x34] sm:$0xf] }
 0x20e   : > { %v989_v21 = vld [vmem:[%s1766_s18 + $0x38] sm:$0xf]  ;;  %v991_v22 = vld [vmem:[%s1766_s18 + $0x3c] sm:$0xf]  ;;  %988 = vst [vmem:[%s945_s9 + $0x68] sm:$0xf] %v987_v20 }
 0x20f   : > { %990 = vst [vmem:[%s945_s9 + $0x70] sm:$0xf] %v989_v21  ;;  %992 = vst [vmem:[%s945_s9 + $0x78] sm:$0xf] %v991_v22 }
 0x210 PF: > { %s15_s24 = sadd.s32 1, %s1417_s24   ;;  %s1827_s18 = smov %s1397_s19 }
 0x211   : > { %p12_p11 = scmp.ge.s32.totalorder %s15_s24, 6   ;;  %s1828_s19 = smov %s1508_s8 }
 0x212   : > { %s1829_s20 = smov %s1409_s22  ;;  %s1830_s21 = smov %s1413_s23 }
 0x213   : > { %s1831_s22 = smov %s1834_s25  ;;  %s1832_s23 = smov %s1838_s26 }
 0x214   :  { %14 = sbr.rel (!%p12_p11) target bundleno = 4 (0x4), region = 111 }

</bundles_post_ra>
